<compile_context>
chip_gen: v6e
topology: v6e:2x2x1
jax: 0.10.0
libtpu: 0.0.40
codegen_flags: <defaults>
</compile_context>

<pallas_src>
import functools

import jax
import jax.numpy as jnp
from jax import lax
from jax.experimental import pallas as pl
from jax.experimental.pallas import tpu as pltpu


# ----------------------------------------------------------------------------
# Generation-aware VMEM budgeting
# ----------------------------------------------------------------------------
def _physical_vmem_bytes():
    try:
        return int(pltpu.get_tpu_info().vmem_capacity_bytes)
    except Exception:
        return 128 << 20   # v5e/v6e physical; conservative fallback


_PHYS_VMEM = _physical_vmem_bytes()
# Scoped request ~3/8 of physical, clamped to [32 MiB, 64 MiB]:
#   v5e/v6e (128 MiB phys) -> 48 MiB scoped; v7x (64 MiB phys) -> 32 MiB scoped.
_VMEM_LIMIT_BYTES = int(min(max(32 << 20, (_PHYS_VMEM * 3) // 8), 64 << 20))
_VMEM_PLAN_BYTES = (_VMEM_LIMIT_BYTES * 3) // 4   # planning budget (headroom kept)


def _compiler_params(semantics):
    return pltpu.CompilerParams(dimension_semantics=semantics,
                                vmem_limit_bytes=_VMEM_LIMIT_BYTES)


def _pick_row_tile(M, K, N_total, in_itemsize, out_itemsize, cap=512):
    """Row tile for weight-resident linears: biggest 8-aligned tile that fits
    the VMEM plan, divides M, and leaves >=2 grid steps for v7x megacore."""
    fixed = 2 * (K * N_total * in_itemsize + N_total * 4)           # resident W (+bias)
    per_row = 2 * (K * in_itemsize + N_total * out_itemsize) + N_total * 4  # dbl-buf x/out + f32 acc
    avail = max(_VMEM_PLAN_BYTES - fixed, 8 * per_row)
    cap = int(min(cap, max(8, ((avail // per_row) // 8) * 8)))
    if M <= cap:
        if M >= 16 and M % 16 == 0:
            return M // 2            # >=2 blocks so both v7x TensorCores get work
        return M                      # full-extent block (always legal)
    t = cap
    while t >= 8:                     # largest 8-aligned divisor of M under cap
        if M % t == 0:
            return t
        t -= 8
    return M                          # no aligned divisor: single full-extent block


# ----------------------------------------------------------------------------
# Kernel 1: row-tiled dense linear  y = x @ W + b   (W stored as (in, out))
# ----------------------------------------------------------------------------
def _linear_bias_kernel(x_ref, w_ref, b_ref, o_ref):
    o_ref[...] = (
        jnp.dot(x_ref[...], w_ref[...], preferred_element_type=jnp.float32)
        + b_ref[...]
    ).astype(o_ref.dtype)


def linear_pallas(x2d, W, b, *, out_dtype=jnp.float32, row_tile_cap=512):
    M, K = x2d.shape
    N = W.shape[1]
    tm = _pick_row_tile(M, K, N, x2d.dtype.itemsize,
                        jnp.dtype(out_dtype).itemsize, cap=row_tile_cap)
    # TODO(synk): add a K (contraction) grid axis with a VMEM f32 accumulator
    # once K*N*itemsize no longer fits resident (very large model_dim).
    # TODO(synk): pipeline_mode=pl.Buffered(1) on the constant-index weight/bias
    # blocks would save one VMEM copy if/when top-level pallas_call honors it.
    return pl.pallas_call(
        _linear_bias_kernel,
        out_shape=jax.ShapeDtypeStruct((M, N), out_dtype),
        grid=(pl.cdiv(M, tm),),
        in_specs=[
            pl.BlockSpec((tm, K), lambda i: (i, 0)),
            pl.BlockSpec((K, N), lambda i: (0, 0)),   # weight resident
            pl.BlockSpec((1, N), lambda i: (0, 0)),
        ],
        out_specs=pl.BlockSpec((tm, N), lambda i: (i, 0)),
        compiler_params=_compiler_params(("parallel",)),
    )(x2d, W, b.reshape(1, N))


# ----------------------------------------------------------------------------
# Kernel 1b: fused QKV projection with THREE outputs (self-attention fast path)
# x read from HBM once per row tile; the (tm, 3*Dm) MXU result is sliced in
# VMEM and stored directly as k / v / q (no wrapper-side column slices).
# ----------------------------------------------------------------------------
def _qkv_fused_kernel(x_ref, w_ref, b_ref, k_ref, v_ref, q_ref):
    acc = (jnp.dot(x_ref[...], w_ref[...], preferred_element_type=jnp.float32)
           + b_ref[...])
    Dm = k_ref.shape[-1]
    k_ref[...] = acc[:, :Dm].astype(k_ref.dtype)
    v_ref[...] = acc[:, Dm:2 * Dm].astype(v_ref.dtype)
    q_ref[...] = acc[:, 2 * Dm:3 * Dm].astype(q_ref.dtype)


def qkv_fused_pallas(x2d, W_kvq, b_kvq, model_dim, *, out_dtype=jnp.float32,
                     row_tile_cap=512):
    M, K = x2d.shape
    N = W_kvq.shape[1]   # 3 * model_dim
    tm = _pick_row_tile(M, K, N, x2d.dtype.itemsize,
                        jnp.dtype(out_dtype).itemsize, cap=row_tile_cap)
    shp = jax.ShapeDtypeStruct((M, model_dim), out_dtype)
    return pl.pallas_call(
        _qkv_fused_kernel,
        out_shape=(shp, shp, shp),
        grid=(pl.cdiv(M, tm),),
        in_specs=[
            pl.BlockSpec((tm, K), lambda i: (i, 0)),
            pl.BlockSpec((K, N), lambda i: (0, 0)),   # fused weight resident
            pl.BlockSpec((1, N), lambda i: (0, 0)),
        ],
        out_specs=(
            pl.BlockSpec((tm, model_dim), lambda i: (i, 0)),
            pl.BlockSpec((tm, model_dim), lambda i: (i, 0)),
            pl.BlockSpec((tm, model_dim), lambda i: (i, 0)),
        ),
        compiler_params=_compiler_params(("parallel",)),
    )(x2d, W_kvq, b_kvq.reshape(1, N))


# ----------------------------------------------------------------------------
# Kernel 2: scaled dot-product attention over a BLOCK of (batch*head) slices
# (batched einsum matmuls; scale pre-folded into the Q projection).
# ----------------------------------------------------------------------------
def _attn_kernel(q_ref, k_ref, v_ref, *out_refs, approx_softmax, with_probs):
    ctx_ref = out_refs[0]
    s = jnp.einsum("bqd,bkd->bqk", q_ref[...], k_ref[...],
                   preferred_element_type=jnp.float32)
    m = jnp.max(s, axis=-1, keepdims=True)
    e = jnp.exp(s - m)                                   # f32 softmax (v5e-safe)
    denom = jnp.sum(e, axis=-1, keepdims=True)
    if approx_softmax:
        p = e * pl.reciprocal(denom, approx=True)        # EUP slot, VALU freed
    else:
        p = e / denom                                    # exact (parity) path
    if with_probs:
        out_refs[1][...] = p.astype(out_refs[1].dtype)
    ctx_ref[...] = jnp.einsum("bqk,bkd->bqd", p.astype(v_ref.dtype), v_ref[...],
                              preferred_element_type=jnp.float32
                              ).astype(ctx_ref.dtype)


def dot_attention_pallas(q, k, v, *, ctx_dtype=None, attn_dtype=jnp.float32,
                         return_attention=True, approx_softmax=False,
                         head_block=None):
    BH, Sq, D = q.shape
    _, Sk, _ = k.shape
    ctx_dtype = q.dtype if ctx_dtype is None else ctx_dtype
    in_sz = q.dtype.itemsize
    ctx_sz = jnp.dtype(ctx_dtype).itemsize
    attn_sz = jnp.dtype(attn_dtype).itemsize if return_attention else 0

    if head_block is None:
        # Double-buffered I/O blocks PLUS the in-kernel f32 temporaries
        # (s, e, p are ~Sq*Sk each, ctx accumulator is Sq*D) per head.
        io = 2 * ((Sq + 2 * Sk) * D * in_sz + Sq * D * ctx_sz + Sq * Sk * attn_sz)
        tmp = 3 * Sq * Sk * 4 + Sq * D * 4
        head_block = int(max(1, min(BH, _VMEM_PLAN_BYTES // (io + tmp))))
    hb = head_block
    if hb >= BH and BH >= 2:
        hb = (BH + 1) // 2          # >=2 grid steps for v7x's two TensorCores
    while BH % hb != 0:             # keep tiling exact (no ragged tail block)
        hb -= 1

    # TODO(synk): for S >~ 1k (or whenever return_attention=False) switch to
    # flash-style KV tiling (inner "arbitrary" grid axis + online-softmax
    # m/l/acc scratch) so VMEM stays O(hb*S*D) and the O(S^2) HBM writeback
    # disappears -- required to fit v7x's 64 MiB at long sequence lengths.
    # TODO(synk): fuse the context epilogue straight into the final-projection
    # input (lane-dense (rows, model_dim) slab) to skip the (BH,S,D) round-trip.
    kernel = functools.partial(_attn_kernel, approx_softmax=approx_softmax,
                               with_probs=return_attention)
    ctx_shape = jax.ShapeDtypeStruct((BH, Sq, D), ctx_dtype)
    ctx_spec = pl.BlockSpec((hb, Sq, D), lambda i: (i, 0, 0))
    if return_attention:
        out_shape = (ctx_shape, jax.ShapeDtypeStruct((BH, Sq, Sk), attn_dtype))
        out_specs = (ctx_spec, pl.BlockSpec((hb, Sq, Sk), lambda i: (i, 0, 0)))
    else:
        out_shape = ctx_shape
        out_specs = ctx_spec

    result = pl.pallas_call(
        kernel,
        out_shape=out_shape,
        grid=(BH // hb,),
        in_specs=[
            pl.BlockSpec((hb, Sq, D), lambda i: (i, 0, 0)),
            pl.BlockSpec((hb, Sk, D), lambda i: (i, 0, 0)),
            pl.BlockSpec((hb, Sk, D), lambda i: (i, 0, 0)),
        ],
        out_specs=out_specs,
        compiler_params=_compiler_params(("parallel",)),
    )(q, k, v)

    if return_attention:
        return result[0], result[1]
    return result, None


# ----------------------------------------------------------------------------
# Kernel 3: fused final linear + residual add + LayerNorm, row-tiled over
# (B*S, Dm) with the weight resident across row tiles.
# ----------------------------------------------------------------------------
def _final_kernel(ctx_ref, w_ref, b_ref, res_ref, g_ref, beta_ref, o_ref):
    proj = (jnp.dot(ctx_ref[...], w_ref[...], preferred_element_type=jnp.float32)
            + b_ref[...])
    y = res_ref[...].astype(jnp.float32) + proj
    mean = jnp.mean(y, axis=-1, keepdims=True)
    var = jnp.mean(jnp.square(y - mean), axis=-1, keepdims=True)
    yn = (y - mean) * lax.rsqrt(var + 1e-5)
    o_ref[...] = (yn * g_ref[...] + beta_ref[...]).astype(o_ref.dtype)


def final_pallas(ctx2d, Wf, bf, res2d, gamma, beta, *, row_tile_cap=512):
    M, Dm = ctx2d.shape
    tm = _pick_row_tile(M, Dm, Dm, ctx2d.dtype.itemsize, 4, cap=row_tile_cap)
    return pl.pallas_call(
        _final_kernel,
        out_shape=jax.ShapeDtypeStruct((M, Dm), jnp.float32),
        grid=(pl.cdiv(M, tm),),
        in_specs=[
            pl.BlockSpec((tm, Dm), lambda i: (i, 0)),
            pl.BlockSpec((Dm, Dm), lambda i: (0, 0)),   # weight resident
            pl.BlockSpec((1, Dm), lambda i: (0, 0)),
            pl.BlockSpec((tm, Dm), lambda i: (i, 0)),
            pl.BlockSpec((1, Dm), lambda i: (0, 0)),
            pl.BlockSpec((1, Dm), lambda i: (0, 0)),
        ],
        out_specs=pl.BlockSpec((tm, Dm), lambda i: (i, 0)),
        compiler_params=_compiler_params(("parallel",)),
    )(ctx2d, Wf, bf.reshape(1, Dm), res2d,
      gamma.reshape(1, Dm), beta.reshape(1, Dm))


# ----------------------------------------------------------------------------
# Full MultiHeadAttention forward
# ----------------------------------------------------------------------------
def multi_head_attention(params, key, value, query, num_heads, *,
                         use_bf16_mxu=False, attn_dtype=None,
                         approx_softmax=False, return_attention=True):
    # use_bf16_mxu=True is the recommended deployment mode on v5e/v6e/v7x
    # (bf16 MXU inputs, f32 accumulation, f32 softmax/LayerNorm); default is
    # False to preserve exact f32 module semantics for parity testing.
    B, S, model_dim = query.shape
    dim_per_head = model_dim // num_heads

    # Faithful PyTorch quirk: scale uses *integer* division. Guard the
    # divide-by-zero case (dim_per_head < num_heads) the module shares.
    assert dim_per_head // num_heads > 0, (
        "dim_per_head // num_heads == 0 -> infinite scale "
        "(same failure mode as the PyTorch module)")
    scale = float(dim_per_head // num_heads) ** (-0.5)

    residual = query
    mxu_dtype = jnp.bfloat16 if use_bf16_mxu else jnp.float32
    if attn_dtype is None:
        attn_dtype = jnp.float32

    # Fold the attention scale into the Q projection: (x@Wq+bq)*scale ==
    # x@(Wq*scale) + bq*scale -- removes the S*S score multiply entirely.
    Wq_s = (params["Wq"] * scale).astype(mxu_dtype)
    bq_s = params["bq"] * scale

    q2d_in = query.reshape(B * S, model_dim).astype(mxu_dtype)

    if (key is query) and (value is query):
        # Self-attention fast path: one fused (Dm, 3*Dm) matmul, x read once,
        # K/V/Q written as three kernel outputs in mxu_dtype (no wrapper
        # slices, no wrapper casts).
        W_kvq = jnp.concatenate(
            [params["Wk"].astype(mxu_dtype), params["Wv"].astype(mxu_dtype), Wq_s],
            axis=1)
        b_kvq = jnp.concatenate([params["bk"], params["bv"], bq_s], axis=0)
        k2d, v2d, q2d = qkv_fused_pallas(q2d_in, W_kvq, b_kvq, model_dim,
                                         out_dtype=mxu_dtype)
    else:
        # General cross-attention: distinct inputs -> three row-tiled linears.
        Bk, Sk, _ = key.shape
        Bv, Sv, _ = value.shape
        k2d = linear_pallas(key.reshape(Bk * Sk, model_dim).astype(mxu_dtype),
                            params["Wk"].astype(mxu_dtype), params["bk"],
                            out_dtype=mxu_dtype)
        v2d = linear_pallas(value.reshape(Bv * Sv, model_dim).astype(mxu_dtype),
                            params["Wv"].astype(mxu_dtype), params["bv"],
                            out_dtype=mxu_dtype)
        q2d = linear_pallas(q2d_in, Wq_s, bq_s, out_dtype=mxu_dtype)

    # Exact PyTorch `.view(batch*heads, -1, dim_per_head)` semantics
    # (raw row-major reshape -- intentional parity with the source module,
    #  NOT a standard head split).
    k = k2d.reshape(B * num_heads, -1, dim_per_head)
    v = v2d.reshape(B * num_heads, -1, dim_per_head)
    q = q2d.reshape(B * num_heads, -1, dim_per_head)

    context, attention = dot_attention_pallas(
        q, k, v, ctx_dtype=mxu_dtype, attn_dtype=attn_dtype,
        return_attention=return_attention, approx_softmax=approx_softmax)

    # context.view(B, -1, H*D) + row-wise final stage; composing the raw
    # reshapes gives the same (B*S, model_dim) row layout.
    ctx2d = context.reshape(B * S, model_dim)
    res2d = residual.reshape(B * S, model_dim)

    out2d = final_pallas(ctx2d, params["Wf"].astype(mxu_dtype), params["bf"],
                         res2d, params["gamma"], params["beta"])
    output = out2d.reshape(B, S, model_dim)
    return output, attention


# ----------------------------------------------------------------------------
# Deterministic parameter init (same shapes as the nn.Module's __init__)
# ----------------------------------------------------------------------------
def init_params(rng, model_dim):
    def init_linear(kw, kb, fan_in, fan_out):
        bound = 1.0 / (fan_in ** 0.5)
        # stored as (in, out) so that x @ W == x @ W_pytorch.T
        W = jax.random.uniform(kw, (fan_in, fan_out), jnp.float32, -bound, bound)
        b = jax.random.uniform(kb, (fan_out,), jnp.float32, -bound, bound)
        return W, b

    ks = jax.random.split(rng, 8)
    Wk, bk = init_linear(ks[0], ks[1], model_dim, model_dim)
    Wv, bv = init_linear(ks[2], ks[3], model_dim, model_dim)
    Wq, bq = init_linear(ks[4], ks[5], model_dim, model_dim)
    Wf, bf = init_linear(ks[6], ks[7], model_dim, model_dim)
    gamma = jnp.ones((model_dim,), jnp.float32)   # LayerNorm default init
    beta = jnp.zeros((model_dim,), jnp.float32)
    return dict(Wk=Wk, bk=bk, Wv=Wv, bv=bv, Wq=Wq, bq=bq,
                Wf=Wf, bf=bf, gamma=gamma, beta=beta)


# ----------------------------------------------------------------------------
# Pure-JAX reference (mirrors the PyTorch module) for a coarse parity check
# ----------------------------------------------------------------------------
def _reference(params, key, value, query, num_heads):
    B, S, Dm = query.shape
    dph = Dm // num_heads
    scale = float(dph // num_heads) ** (-0.5)
    k = (key.reshape(-1, Dm) @ params["Wk"] + params["bk"]).reshape(B * num_heads, -1, dph)
    v = (value.reshape(-1, Dm) @ params["Wv"] + params["bv"]).reshape(B * num_heads, -1, dph)
    q = (query.reshape(-1, Dm) @ params["Wq"] + params["bq"]).reshape(B * num_heads, -1, dph)
    attn = jax.nn.softmax(jnp.einsum("bqd,bkd->bqk", q, k) * scale, axis=-1)
    ctx = jnp.einsum("bqk,bkd->bqd", attn, v).reshape(-1, Dm)
    y = query.reshape(-1, Dm) + (ctx @ params["Wf"] + params["bf"])
    mean = y.mean(-1, keepdims=True)
    var = ((y - mean) ** 2).mean(-1, keepdims=True)
    out = (y - mean) / jnp.sqrt(var + 1e-5) * params["gamma"] + params["beta"]
    return out.reshape(B, S, Dm), attn


if __name__ == "__main__":
    B, S, model_dim, num_heads = 2, 8, 32, 4

    root = jax.random.PRNGKey(0)
    k_in, k_par = jax.random.split(root)
    ki = jax.random.split(k_in, 3)
    key_in = jax.random.normal(ki[0], (B, S, model_dim), jnp.float32)
    value_in = jax.random.normal(ki[1], (B, S, model_dim), jnp.float32)
    query_in = jax.random.normal(ki[2], (B, S, model_dim), jnp.float32)

    params = init_params(k_par, model_dim)

    # General path: distinct key/value/query, f32 MXU (exact module semantics).
    out1, attn1 = multi_head_attention(params, key_in, value_in, query_in, num_heads)
    # Self-attention fast path: fused 3-output QKV projection, bf16 MXU inputs,
    # bf16 attention-probs writeback, approximate softmax reciprocal (EUP).
    out2, attn2 = multi_head_attention(params, query_in, query_in, query_in, num_heads,
                                       use_bf16_mxu=True, attn_dtype=jnp.bfloat16,
                                       approx_softmax=True)
    jax.block_until_ready((out1, attn1, out2, attn2))

    assert out1.shape == (B, S, model_dim)
    assert attn1.shape == (B * num_heads, S, S)
    assert out2.shape == (B, S, model_dim)
    assert attn2.shape == (B * num_heads, S, S)
    assert bool(jnp.all(jnp.isfinite(out1))) and bool(jnp.all(jnp.isfinite(out2)))

    # Coarse parity check against the pure-JAX reference (loose tolerance to
    # accommodate TPU f32-matmul precision modes; the bf16 run is not compared).
    ref_out, ref_attn = _reference(params, key_in, value_in, query_in, num_heads)
    assert bool(jnp.allclose(out1, ref_out, atol=3e-2, rtol=3e-2))
    assert bool(jnp.allclose(attn1, ref_attn, atol=3e-2, rtol=3e-2))

    print("KERNEL_OK")
</pallas_src>

<mosaic_0001>
module attributes {stable_mosaic.version = 11 : i64} {
  func.func @_linear_bias_kernel(%arg0: i32, %arg1: memref<8x32xf32, #tpu.memory_space<vmem>>, %arg2: memref<32x32xf32, #tpu.memory_space<vmem>>, %arg3: memref<1x32xf32, #tpu.memory_space<vmem>>, %arg4: memref<8x32xf32, #tpu.memory_space<vmem>>) attributes {dimension_semantics = [#tpu.dimension_semantics<parallel>], iteration_bounds = array<i64: 2>, scalar_prefetch = 0 : i64, scratch_operands = 0 : i64, tpu.core_type = #tpu.core_type<tc>, window_params = [{transform_indices = @transform_0, window_bounds = array<i64: 8, 32>}, {pipeline_mode = #tpu.pipeline_mode<synchronous>, transform_indices = @transform_1, window_bounds = array<i64: 32, 32>}, {pipeline_mode = #tpu.pipeline_mode<synchronous>, transform_indices = @transform_2, window_bounds = array<i64: 1, 32>}, {transform_indices = @transform_3, window_bounds = array<i64: 8, 32>}]} {
    %c0 = arith.constant 0 : index
    %c0_0 = arith.constant 0 : index
    %0 = vector.load %arg1[%c0, %c0_0] : memref<8x32xf32, #tpu.memory_space<vmem>>, vector<8x32xf32>
    %c0_1 = arith.constant 0 : index
    %c0_2 = arith.constant 0 : index
    %1 = vector.load %arg2[%c0_1, %c0_2] : memref<32x32xf32, #tpu.memory_space<vmem>>, vector<32x32xf32>
    %cst = arith.constant dense<0.000000e+00> : vector<8x32xf32>
    %2 = tpu.matmul %0, %1, %cst {dimension_numbers = #tpu.dot_dimension_numbers<[1], [0], [0], [1], [0, 0, 1, 1], [], []>} : vector<8x32xf32>, vector<32x32xf32>, vector<8x32xf32> -> vector<8x32xf32>
    %c0_3 = arith.constant 0 : index
    %c0_4 = arith.constant 0 : index
    %3 = vector.load %arg3[%c0_3, %c0_4] : memref<1x32xf32, #tpu.memory_space<vmem>>, vector<1x32xf32>
    %4 = vector.broadcast %3 : vector<1x32xf32> to vector<8x32xf32>
    %5 = arith.addf %2, %4 : vector<8x32xf32>
    %c0_5 = arith.constant 0 : index
    %c0_6 = arith.constant 0 : index
    %6 = vector.load %arg4[%c0_5, %c0_6] : memref<8x32xf32, #tpu.memory_space<vmem>>, vector<8x32xf32>
    tpu.vector_store %arg4[%c0_5, %c0_6], %5 {strides = array<i32>} : memref<8x32xf32, #tpu.memory_space<vmem>>, vector<8x32xf32>,
    return
  }
  func.func @transform_0(%arg0: i32) -> (i32, i32) {
    %c0_i32 = arith.constant 0 : i32
    %c0_i32_0 = arith.constant 0 : i32
    return %arg0, %c0_i32 : i32, i32
  }
  func.func @transform_1(%arg0: i32) -> (i32, i32) {
    %c0_i32 = arith.constant 0 : i32
    %c0_i32_0 = arith.constant 0 : i32
    %c0_i32_1 = arith.constant 0 : i32
    return %c0_i32, %c0_i32_0 : i32, i32
  }
  func.func @transform_2(%arg0: i32) -> (i32, i32) {
    %c0_i32 = arith.constant 0 : i32
    %c0_i32_0 = arith.constant 0 : i32
    %c0_i32_1 = arith.constant 0 : i32
    return %c0_i32, %c0_i32_0 : i32, i32
  }
  func.func @transform_3(%arg0: i32) -> (i32, i32) {
    %c0_i32 = arith.constant 0 : i32
    %c0_i32_0 = arith.constant 0 : i32
    return %arg0, %c0_i32 : i32, i32
  }
}

</mosaic_0001>

<bundles_post_ra>
// kernel: tpu_custom_call.1
= control target key start
LH: loop header
LB: loop body
LE: loop exit
PB: predicated region body
PF: predicated region fallthrough
CT: control target
= control target key end

     0   :  { %8 = vsyncpa [#allocation3], 0  ;;  %s789_s0 = inlined_call_operand.hbm [shape: f32[16,32], index: 0, kind: input, shape index: {}]   ;;  %s790_s1 = inlined_call_operand.hbm [shape: f32[32,32], index: 1, kind: input, shape index: {}]   ;;  %s791_s2 = inlined_call_operand.vmem [shape: f32[1,32], index: 2, kind: input, shape index: {}]   ;;  %s792_s3 = inlined_call_operand.hbm [shape: f32[16,32], index: 3, kind: output, shape index: {}]  }
   0x1   :  { %10 = vsyncpa [#allocation3 + $0x1], 0 }
   0x2   :  { %11 = vsyncpa [#allocation6], 0 }
   0x3   :  { %12 = vsyncpa [#allocation4], 0 }
   0x4   :  { %14 = vsyncpa [#allocation4 + $0x1], 0  ;;  %s626_s12 = smov 0   ;;  %s628_s13 = smov 0  }
   0x5   :  { %s630_s14 = smov 0   ;;  %s632_s15 = smov 0  }
   0x6 LB: > { %s647_s16 = sadd.s32 4294967295, %s597_s15   ;;  %s382_s17 = sadd.s32 4294967294, %s597_s15   ;;  %s597_s15 = sphi %s632_s15, %s814_s15   ;;  %s593_s14 = sphi %s630_s14, %s813_s14   ;;  %s589_s13 = sphi %s628_s13, %s812_s13   ;;  %s585_s12 = sphi %s626_s12, %s811_s12  }
   0x7   : > { %p40_p0 = scmp.ne.s32.totalorder %s589_s13, %s585_s12  ;;  %p793_p1 = scmp.eq.s32.totalorder %s647_s16, 0 }
   0x8   : > { %p112_p3 = scmp.eq.s32.totalorder %s382_s17, 1  ;;  %p383_p5 = scmp.ge.s32.totalorder %s597_s15, 1 }
   0x9   : > { %p656_p4 = por %p793_p1, %p40_p0  ;;  %p119_p7 = scmp.lt.s32.totalorder %s597_s15, 3 }
   0xa   : > { %p661_p6 = por %p112_p3, %p40_p0  ;;  %s599_s21 = smov [#allocation5]  }
   0xb   : > { %s797_s18 = scalar_select %p656_p4, 1, 0 }
   0xc   : > { %s798_s19 = scalar_select %p661_p6, 1, 0 }
   0xd   : > { %p666_p8 = pnand %p383_p5, %p119_p7  ;;  %s131_s22 = sshll.u32 %s599_s21, 4  ;;  %s132_s22 = int_to_ptr.vmem [resolvable:$true] %s131_s22 }
   0xe   : > { %s680_s24 = sadd.s32 1, %s597_s15   ;;  %s27_s25 = sadd.s32 1, %s593_s14 }
   0xf   : > { %s799_s20 = scalar_select %p666_p8, 1, 0 }
  0x10   : > { %p422_p9 = pneg %p666_p8  ;;  %s24_s26 = ssub.s32 %s597_s15, %s680_s24 }
  0x11   : > { %s486_s27 = scalar_lea.vmem %s132_s22, 512  ;;  %p494_p5 = scmp.lt.s32.totalorder %s132_s22, %s132_s22 }
  0x12   : > { %p675_p11 = pnand %p422_p9, %p793_p1  ;;  %p487_p13 = scmp.ne.s32.totalorder %s132_s22, %s486_s27 }
  0x13   : > { %p495_p7 = scmp.lt.s32.totalorder %s486_s27, %s486_s27 }
  0x14   : > { %p477_p12 = pneg %p675_p11 }
  0x15   : > { %p496_p10 = por %p495_p7, %p494_p5 }
  0x16   : > { %p489_p0 = pnand %p487_p13, %p477_p12 }
  0x18   : > { %p490_p3 = pneg %p489_p0 }
  0x1a   : > { %p497_p2 = pnand %p496_p10, %p490_p3 }
  0x1c   : > { %500 = shalt.err (!%p497_p2)
}
  0x1d   : > { %s600_s28 = smov 128   ;;  %s601_s29 = smov 8  }
  0x1e   : > { %425 = dma.hbm_to_vmem [thread:$0]  (!%p675_p11), %s790_s1, 512, %s132_s22, [#allocation6], %s600_s28, %s600_s28, %s601_s29  }
  0x1f   : > { %p25_p9 = scmp.eq.s32.totalorder %s24_s26, 0  ;;  %p34_p12 = scmp.ne.s32.totalorder %s593_s14, %s589_s13 }
  0x20   : > { %p35_p10 = scmp.eq.s32.totalorder %s597_s15, 0  ;;  %p435_p2 = scmp.lt.s32.totalorder %s597_s15, 2 }
  0x21   : > { %s697_s5 = scalar_select %p25_p9, %s593_s14, %s27_s25  }
  0x22   : > { %p36_p13 = por %p35_p10, %p34_p12  ;;  %p801_p0 = scmp.eq.s32.totalorder %s647_s16, 1 }
  0x23   : > { %s148_s7 = sand.u32 1, %s593_s14   ;;  %s387_s8 = sshll.u32 %s597_s15, 7 }
  0x24   : > { %p701_p3 = por %p801_p0, %p34_p12  ;;  %s386_s9 = sshll.u32 %s148_s7, 3 }
  0x25   : > { %s710_s17 = scalar_lea.hbm %s789_s0, %s387_s8  ;;  %s152_s21 = scalar_lea.vmem [#allocation2], %s386_s9 }
  0x26   : > { %s802_s6 = scalar_select %p701_p3, 1, 0 }
  0x27   : > { %s159_s22 = sshll.u32 %s152_s21, 4  ;;  %p712_p11 = pnand %p435_p2, %p36_p13  ;;  %s160_s22 = int_to_ptr.vmem [resolvable:$true] %s159_s22 }
  0x28   : > { %s149_s25 = scalar_lea.sflag [#allocation3], %s148_s7  ;;  %s501_s26 = scalar_lea.hbm %s710_s17, 128 }
  0x29   : > { %p502_p5 = scmp.ne.s32.totalorder %s710_s17, %s501_s26  ;;  %p503_p7 = pneg %p712_p11 }
  0x2a   : > { %s506_s29 = scalar_lea.hbm %s789_s0, 256  ;;  %p507_p10 = scmp.lt.s32.totalorder %s710_s17, %s789_s0 }
  0x2b   : > { %p504_p9 = pnand %p503_p7, %p502_p5  ;;  %p508_p2 = scmp.lt.s32.totalorder %s506_s29, %s501_s26 }
  0x2d   : > { %p505_p12 = pneg %p504_p9  ;;  %p509_p13 = por %p508_p2, %p507_p10 }
  0x2f   : > { %p510_p0 = pnand %p509_p13, %p505_p12 }
  0x31   : > { %513 = shalt.err (!%p510_p0)
}
  0x32   : > { %s514_s8 = scalar_lea.vmem %s160_s22, 128  ;;  %s602_s7 = smov [#allocation2]  }
  0x33   : > { %p515_p1 = scmp.ne.s32.totalorder %s160_s22, %s514_s8  ;;  %s519_s9 = sshll.u32 %s602_s7, 4  ;;  %s520_s9 = int_to_ptr.vmem [resolvable:$false] %s519_s9 }
  0x34   : > { %s521_s10 = scalar_lea.vmem %s520_s9, 256  ;;  %p522_p5 = scmp.lt.s32.totalorder %s160_s22, %s520_s9 }
  0x35   : > { %p517_p6 = pnand %p515_p1, %p503_p7  ;;  %p523_p9 = scmp.lt.s32.totalorder %s521_s10, %s514_s8 }
  0x37   : > { %p518_p3 = pneg %p517_p6  ;;  %p524_p4 = por %p523_p9, %p522_p5 }
  0x39   : > { %p525_p8 = pnand %p524_p4, %p518_p3 }
  0x3b   : > { %528 = shalt.err (!%p525_p8)
}
  0x3c   : > { %429 = dma.hbm_to_vmem [thread:$0]  (!%p712_p11), %s710_s17, 128, %s160_s22, %s149_s25  }
  0x3d   : > { %p804_p12 = scmp.ne.s32.totalorder %s799_s20, 0 }
  0x3e   : > { %s733_s11 = sand.u32 (!%p804_p12), 1, %s589_s13   ;;  %p805_p1 = scmp.ne.s32.totalorder (!%p804_p12), %s797_s18, 0 }
  0x3f   : > { %168 = sbr.rel (%p804_p12) target bundleno = 289 (0x121), region = 32  ;;  %s389_s21 = sshll.u32 (!%p804_p12), %s733_s11, 3 }
  0x40   : > { %s171_s26 = scalar_lea.sflag (!%p804_p12), [#allocation3], %s733_s11  ;;  %s174_s27 = scalar_lea.vmem (!%p804_p12), [#allocation2], %s389_s21 }
  0x44   : > { %572 = dma.done.wait (%p805_p1), %s171_s26, 128  }
  0x45   : > { %574 = vsyncadd (%p805_p1), %s171_s26, 4294967168  ;;  %p806_p4 = scmp.eq.s32.totalorder %s647_s16, 0 }
  0x47   : > { %576 = dma.done.wait (%p806_p4), [#allocation6], 512   ;;  %p807_p6 = pmov %p806_p4 }
  0x48   : > { %v603_v0 = vmov 0.0   ;;  %vm604_vm0 = vmmov 0   ;;  %v205_v1 = vld [vmem:[#allocation5 + $0x18] sm:$0xff]  ;;  %v204_v2 = vld [vmem:[#allocation5 + $0x10] sm:$0xff]  ;;  %v203_v3 = vld [vmem:[#allocation5 + $0x8] sm:$0xff]  ;;  %vm213_vm1 = vcmask 261120  }
  0x49   : > { %578 = vsyncadd (%p807_p6), [#allocation6], 4294966784  ;;  %403 = vmatprep.subr.mxu0 %v603_v0  ;;  %411 = vmatprep.mubr.msk.f32.mxu0 %vm604_vm0, %v603_v0  ;;  %v202_v4 = vld [vmem:[#allocation5] sm:$0xff]  ;;  %v201_v5 = vld [vmem:[%s174_s27] sm:$0xff]  ;;  %s395_s17 = sshll.u32 %s647_s16, 7  ;;  %s200_s22 = scalar_lea.vmem [#allocation7], %s389_s21 }
  0x4a   : > { %404 = vmatpush3.msra.mxu0 %v205_v1  ;;  %v392_v6 = vld [vmem:[%s791_s2] ss:$0 sm:$0xff]  ;;  %s302_s23 = sshll.u32 %s200_s22, 4  ;;  %s752_s29 = scalar_lea.hbm %s792_s3, %s395_s17  ;;  %s303_s23 = int_to_ptr.vmem [resolvable:$true] %s302_s23 }
  0x4b   : > { %405 = vmatprep.subr.mxu0 %v603_v0  ;;  %s289_s30 = scalar_lea.sflag [#allocation4], %s733_s11  ;;  %s529_s4 = scalar_lea.vmem %s303_s23, 128 }
  0x4c   : > { %406 = vmatpush3.msra.mxu0 %v204_v2  ;;  %p530_p8 = scmp.ne.s32.totalorder %s303_s23, %s529_s4  ;;  %p808_p3 = scmp.ne.s32.totalorder %s802_s6, 0 }
  0x4d   : > { %407 = vmatprep.subr.mxu0 %v603_v0  ;;  %s605_s8 = smov [#allocation7]  }
  0x4e   : > { %408 = vmatpush3.msra.mxu0 %v203_v3  ;;  %p531_p11 = pnand %p530_p8, %p808_p3  ;;  %s533_s16 = sshll.u32 %s605_s8, 4  ;;  %s534_s16 = int_to_ptr.vmem [resolvable:$false] %s533_s16 }
  0x4f   : > { %409 = vmatprep.subr.mxu0 %v603_v0  ;;  %s535_s7 = scalar_lea.vmem %s534_s16, 256  ;;  %p536_p10 = scmp.lt.s32.totalorder %s303_s23, %s534_s16 }
  0x50   : > { %410 = vmatpush3.msra.mxu0 %v202_v4  ;;  %p532_p7 = pneg %p531_p11  ;;  %p537_p2 = scmp.lt.s32.totalorder %s535_s7, %s529_s4 }
  0x51   : > { %412 = vmatmul.mubr.msk.f32.vlgmr.msra.gmra.mxu0 %vm213_vm1, %v201_v5 }
  0x52   : > { %p538_p13 = por %p537_p2, %p536_p10 }
  0x54   : > { %p539_p0 = pnand %p538_p13, %p532_p7 }
 0x111   : > { %v283_v7 = vpop.f32.mrf.mxu0 }
 0x112   : > { %v284_v8 = vadd.f32 %v392_v6, %v283_v7 }
 0x113   : > { %v413_v9 = vpop.f32.mrf.mxu0 }
 0x114   : > { %287 = vst.msk [vmem:[%s200_s22] sm:$0xff] %vm213_vm1, %v284_v8 }
 0x115   : > { %542 = shalt.err (!%p539_p0)
}
 0x116   : > { %s543_s9 = scalar_lea.hbm %s752_s29, 128  ;;  %s547_s21 = scalar_lea.hbm %s792_s3, 256 }
 0x117   : > { %p544_p5 = scmp.ne.s32.totalorder %s752_s29, %s543_s9  ;;  %p548_p1 = scmp.lt.s32.totalorder %s752_s29, %s792_s3 }
 0x118   : > { %p549_p4 = scmp.lt.s32.totalorder %s547_s21, %s543_s9 }
 0x119   : > { %p545_p9 = pnand %p544_p5, %p808_p3 }
 0x11a   : > { %p550_p6 = por %p549_p4, %p548_p1 }
 0x11b   : > { %p546_p12 = pneg %p545_p9 }
 0x11d   : > { %p551_p8 = pnand %p550_p6, %p546_p12 }
 0x11f   : > { %554 = shalt.err (!%p551_p8)
}
 0x120   : > { %420 = dma.vmem_to_hbm [thread:$0]  (%p808_p3), %s303_s23, 128, %s752_s29, %s289_s30  }
 0x121 PF: > { %s314_s18 = sand.u32 1, %s585_s12   ;;  %p809_p11 = scmp.ne.s32.totalorder %s798_s19, 0 }
 0x122   : > { %p810_p7 = scmp.ge.s32.totalorder %s597_s15, 2  ;;  %s315_s20 = scalar_lea.sflag [#allocation4], %s314_s18 }
 0x124   : > { %p431_p10 = pnand %p810_p7, %p809_p11 }
 0x126   : > { %p432_p2 = pneg %p431_p10 }
 0x128   : > { %580 = dma.done.wait (%p432_p2), %s315_s20, 128  }
 0x129   : > { %582 = vsyncadd (%p432_p2), %s315_s20, 4294967168  ;;  %p17_p13 = scmp.ge.s32.totalorder %s680_s24, 4   ;;  %s811_s12 = smov %s589_s13 }
 0x12a   : > { %s812_s13 = smov %s593_s14  ;;  %s813_s14 = smov %s697_s5 }
 0x12b   : > { %s814_s15 = smov %s680_s24  ;;  %19 = sbr.rel (!%p17_p13) target bundleno = 6 (0x6), region = 81 }
 0x130   :  { %320 = vsyncpa [#allocation3], 1 }
 0x131   :  { %322 = vsyncpa [#allocation3 + $0x1], 1 }
 0x132   :  { %323 = vsyncpa [#allocation6], 1 }
 0x133   :  { %324 = vsyncpa [#allocation4], 1 }
 0x134   :  { %326 = vsyncpa [#allocation4 + $0x1], 1 }

</bundles_post_ra>
